<compile_context>
chip_gen: v6e
topology: v6e:2x2x1
jax: 0.10.0
libtpu: 0.0.40
codegen_flags: <defaults>
</compile_context>

<pallas_src>
import functools

import jax
import jax.numpy as jnp
from jax.experimental import pallas as pl
from jax.experimental.pallas import tpu as pltpu

_F32 = jnp.float32
_BF16 = jnp.bfloat16
_REP_MAX_IN_C = 32          # constant-repeat-matmul message path only for small in_c


def _oh_bf16(cond):
    """Exact 0/1 matrix from a boolean compare, materialized in bf16."""
    return jnp.where(cond, 1.0, 0.0).astype(_BF16)


# ---------------------------------------------------------------------------
# Fused Pallas kernel: all layers + BN + ReLU + mean-pool + readout MLP
# ---------------------------------------------------------------------------
def _fused_forward_kernel(*refs, dims, n_nodes, n_edges, n_angles, n_graphs,
                          mlp_hidden):
    n_layers = len(dims) - 1
    (x_ref, col_ref, rowj_ref, eattr_ref, ang_ref,
     pool_ref, edft_ref, vec_ref) = refs[:8]
    wcat_refs = refs[8:8 + n_layers]
    w1x_ref = refs[8 + n_layers]
    out_ref = refs[8 + n_layers + 1]

    n_ea = n_edges + n_angles

    # ---- prologue: built ONCE, reused by every layer ----------------------
    # Exact 0/1 gather / fused-scatter one-hots in bf16: half the VMEM of the
    # O(E*N) matrices and native bf16 MXU rate for the big dots.
    col = col_ref[...]                                             # (E, 1)
    gather_oh = _oh_bf16(
        jax.lax.broadcasted_iota(jnp.int32, (n_edges, n_nodes), 1) == col)
    rowj = rowj_ref[...]                                           # (1, E[+A])
    scat = _oh_bf16(
        jax.lax.broadcasted_iota(jnp.int32, (n_nodes, n_ea), 0) == rowj)

    # One constant 0/1 "repeat" matrix per UNIQUE (in_c, out_c) pair, hoisted
    # out of the layer loop (JAX does not CSE broadcast_in_dim).
    rep_cache = {}
    for li in range(n_layers):
        in_c, out_c = dims[li], dims[li + 1]
        if in_c > _REP_MAX_IN_C or (in_c, out_c) in rep_cache:
            continue
        L = in_c * out_c
        lane = jax.lax.broadcasted_iota(jnp.int32, (in_c, L), 1)
        rowi = jax.lax.broadcasted_iota(jnp.int32, (in_c, L), 0)
        rep_cache[(in_c, out_c)] = _oh_bf16(
            (lane >= rowi * out_c) & (lane < rowi * out_c + out_c))

    vec = vec_ref[...]                                             # packed (1,k) params
    eattr = eattr_ref[...]                                         # (E, 1)
    ang = ang_ref[...]                                             # (A, 1)

    h = x_ref[...]                                                 # (N, dims[0]) f32
    vrow = 0
    for li in range(n_layers):
        in_c, out_c = dims[li], dims[li + 1]
        L = in_c * out_c
        ew1 = vec[vrow + 0:vrow + 1, :32]
        eb1 = vec[vrow + 1:vrow + 2, :32]
        aw1 = vec[vrow + 2:vrow + 3, :32]
        ab1 = vec[vrow + 3:vrow + 4, :32]
        eb2 = vec[vrow + 4:vrow + 5, :L]
        ab2 = vec[vrow + 5:vrow + 6, :out_c]
        bn_s = vec[vrow + 6:vrow + 7, :out_c]
        bn_b = vec[vrow + 7:vrow + 8, :out_c]
        vrow += 8
        wcat = wcat_refs[li][...]                                  # (32, L+out_c)
        ew2 = wcat[:, :L]
        aw2 = wcat[:, L:L + out_c]

        # ---- edge MLP: K=1 first linear as a VPU broadcast (f32), second
        #      linear on the MXU in bf16 with f32 accumulation.
        eh = jnp.maximum(eattr * ew1 + eb1, 0.0)                   # (E, 32) f32
        ew = jnp.dot(eh.astype(_BF16), ew2.astype(_BF16),
                     preferred_element_type=_F32) + eb2            # (E, L) f32

        # ---- gather x[col] via exact one-hot matmul (index_add semantics)
        xg = jnp.dot(gather_oh, h.astype(_BF16),
                     preferred_element_type=_F32)                  # (E, in_c)

        # ---- per-edge matvec: repeat-matmul + full-width VPU multiply +
        #      log2(in_c) roll-fold reduction on the (otherwise idle) XLU.
        if in_c <= _REP_MAX_IN_C:
            xr = jnp.dot(xg.astype(_BF16), rep_cache[(in_c, out_c)],
                         preferred_element_type=_F32)              # (E, L)
            prod = xr * ew                                         # (E, L) f32
            lp = out_c * pl.next_power_of_2(in_c)
            if lp > L:   # non-power-of-two in_c: zero-pad, then roll-fold
                prod = jnp.concatenate(
                    [prod, jnp.zeros((n_edges, lp - L), _F32)], axis=1)
            w = lp
            while w > out_c:
                half = w // 2
                prod = prod + pltpu.roll(prod, lp - half, 1)
                w = half
            msg = prod[:, :out_c]                                  # (E, out_c)
        else:
            # TODO(synk): wide-in_c fallback — replace with a blocked
            # contraction (stride-0 sublane broadcasts of xg columns against
            # ew slabs) to avoid lane-misaligned slice relayouts.
            msg = jnp.zeros((n_edges, out_c), _F32)
            for i in range(in_c):
                msg = msg + xg[:, i:i + 1] * ew[:, i * out_c:(i + 1) * out_c]

        # ---- angle branch: same MLP structure, scatter fused below --------
        if n_angles > 0:
            ah = jnp.maximum(ang * aw1 + ab1, 0.0)                 # (A, 32)
            af = jnp.dot(ah.astype(_BF16), aw2.astype(_BF16),
                         preferred_element_type=_F32) + ab2        # (A, out_c)
            src = jnp.concatenate([msg, af], axis=0)               # (E+A, out_c)
        else:
            src = msg

        # ---- FUSED scatter-add: edges onto row and angle features onto j
        #      in one MXU matmul (larger K, half the MXU launches).
        agg = jnp.dot(scat, src.astype(_BF16),
                      preferred_element_type=_F32)                 # (N, out_c)

        # ---- folded eval-mode BatchNorm + ReLU (+ identity dropout), f32 --
        h = jnp.maximum(agg * bn_s + bn_b, 0.0)

    # ---- readout: mean-pool matrix (1/count folded into its rows outside),
    #      edft folded into a broadcast, tiny B rows -> keep f32 on the MXU.
    pooled = jnp.dot(pool_ref[...], h, preferred_element_type=_F32)  # (B, H)
    w1e = vec[vrow + 0:vrow + 1, :mlp_hidden]
    b1 = vec[vrow + 1:vrow + 2, :mlp_hidden]
    w2t = vec[vrow + 2:vrow + 3, :mlp_hidden]
    b2 = vec[vrow + 3:vrow + 4, :1]
    hid = jnp.dot(pooled, w1x_ref[...], preferred_element_type=_F32)
    hid = jnp.maximum(hid + edft_ref[...] * w1e + b1, 0.0)           # (B, mh)
    out_ref[...] = jnp.sum(hid * w2t, axis=1, keepdims=True) + b2    # (B, 1)


# ---------------------------------------------------------------------------
# Wrapper around pallas_call
# ---------------------------------------------------------------------------
_VMEM = pl.BlockSpec(memory_space=pltpu.MemorySpace.VMEM)


def _round_up(x, m):
    return ((x + m - 1) // m) * m


def _pack_rows(rows, width):
    padded = [jnp.pad(r.astype(jnp.float32), ((0, 0), (0, width - r.shape[1])))
              for r in rows]
    return jnp.concatenate(padded, axis=0)


def _estimate_vmem_bytes(dims, n_nodes, n_edges, n_angles, n_graphs,
                         mlp_hidden, input_bytes):
    bf, f4 = 2, 4
    total = 2 * input_bytes                                        # resident inputs
    total += n_edges * n_nodes * bf + n_nodes * (n_edges + n_angles) * bf
    seen = set()
    peak = 0
    for li in range(len(dims) - 1):
        in_c, out_c = dims[li], dims[li + 1]
        L = in_c * out_c
        lp = out_c * pl.next_power_of_2(in_c)
        if in_c <= _REP_MAX_IN_C and (in_c, out_c) not in seen:
            total += in_c * L * bf
            seen.add((in_c, out_c))
        layer = (n_edges * (32 * f4 + 2 * L * f4 + lp * f4 + in_c * (f4 + bf))
                 + n_angles * (32 + out_c) * f4
                 + (n_edges + n_angles) * out_c * (f4 + bf)
                 + n_nodes * out_c * 2 * f4 + n_nodes * in_c * bf)
        peak = max(peak, layer)
    total += peak
    total += n_graphs * (n_nodes + 2 * mlp_hidden + dims[-1] + 2) * f4
    return int(total)


def _cost_estimate(dims, n_nodes, n_edges, n_angles, n_graphs, mlp_hidden,
                   flat_inputs, out_nbytes):
    flops = 0
    for li in range(len(dims) - 1):
        in_c, out_c = dims[li], dims[li + 1]
        L = in_c * out_c
        flops += 2 * n_edges * 32 * L                       # edge-MLP 2nd linear
        flops += 2 * n_edges * n_nodes * in_c               # one-hot gather
        flops += 2 * n_edges * in_c * L                     # repeat matmul
        flops += 4 * n_edges * L                            # multiply + fold
        flops += 2 * n_angles * 32 * out_c                  # angle-MLP 2nd linear
        flops += 2 * n_nodes * (n_edges + n_angles) * out_c  # fused scatter
    H = dims[-1]
    flops += 2 * n_graphs * (n_nodes * H + H * mlp_hidden + 2 * mlp_hidden)
    bytes_accessed = sum(int(a.size) * a.dtype.itemsize for a in flat_inputs)
    bytes_accessed += out_nbytes
    return pl.CostEstimate(flops=flops, transcendentals=0,
                           bytes_accessed=bytes_accessed)


def angle_gnn_forward(params, x, edge_index, edge_attr, angle_index, angles,
                      batch, edft):
    x = x.astype(jnp.float32)
    n_nodes, in_c0 = x.shape
    n_edges = edge_attr.shape[0]
    n_angles = angles.shape[0]
    n_graphs = edft.shape[0]

    col = edge_index[1].reshape(-1, 1).astype(jnp.int32)    # source nodes (E,1)
    row = edge_index[0].reshape(1, -1).astype(jnp.int32)    # destination nodes
    if n_angles > 0:
        j = angle_index[1].reshape(1, -1).astype(jnp.int32)  # angle centre nodes
        rowj = jnp.concatenate([row, j], axis=1)             # (1, E+A)
        ang = angles.astype(jnp.float32)
    else:
        rowj = row
        ang = jnp.zeros((1, 1), jnp.float32)

    # Mean-pool matrix with 1/count folded into its rows (exact, computed once
    # outside the kernel — no in-kernel divide / cross-lane count reduction).
    counts = jnp.zeros((n_graphs,), jnp.float32).at[batch].add(1.0)
    pool = ((batch[None, :] == jnp.arange(n_graphs)[:, None]).astype(jnp.float32)
            / jnp.maximum(counts, 1.0)[:, None])             # (B, N)

    edft2 = edft.reshape(-1, 1).astype(jnp.float32)

    dims = [in_c0] + [lp["bn_gamma"].shape[1] for lp in params["layers"]]
    mp = params["mlp"]
    mlp_hidden = mp["w1x"].shape[1]

    # Pack every tiny (1,k) parameter into ONE lane-aligned array (one DMA
    # descriptor instead of ~10 per layer); ew2/aw2 packed per layer.
    rows, wcats = [], []
    for lp in params["layers"]:
        bn_scale = lp["bn_gamma"] / jnp.sqrt(lp["bn_var"] + 1e-5)   # folded eval BN
        bn_shift = lp["bn_beta"] - lp["bn_mean"] * bn_scale
        rows += [lp["ew1"], lp["eb1"], lp["aw1"], lp["ab1"],
                 lp["eb2"], lp["ab2"], bn_scale, bn_shift]
        wcats.append(jnp.concatenate([lp["ew2"], lp["aw2"]], axis=1)
                     .astype(jnp.float32))
    rows += [mp["w1e"], mp["b1"], mp["w2"].reshape(1, -1), mp["b2"]]
    width = _round_up(max(r.shape[1] for r in rows), 128)
    vec = _pack_rows(rows, width)

    flat = ([x, col, rowj, edge_attr.astype(jnp.float32), ang, pool, edft2, vec]
            + wcats + [mp["w1x"].astype(jnp.float32)])

    kernel = functools.partial(
        _fused_forward_kernel, dims=tuple(dims), n_nodes=n_nodes,
        n_edges=n_edges, n_angles=n_angles, n_graphs=n_graphs,
        mlp_hidden=mlp_hidden)

    # VMEM limit derived from actual buffer sizes, capped by the chip's VMEM.
    input_bytes = sum(int(a.size) * a.dtype.itemsize for a in flat)
    est = _estimate_vmem_bytes(dims, n_nodes, n_edges, n_angles, n_graphs,
                               mlp_hidden, input_bytes)
    try:
        phys = int(getattr(pltpu.get_tpu_info(), "vmem_capacity_bytes",
                           64 * 1024 * 1024))
    except Exception:
        phys = 64 * 1024 * 1024
    vmem_limit = min(phys * 3 // 4,
                     max(32 * 1024 * 1024, 2 * est + 8 * 1024 * 1024))

    out = pl.pallas_call(
        kernel,
        out_shape=jax.ShapeDtypeStruct((n_graphs, 1), jnp.float32),
        in_specs=[_VMEM] * len(flat),
        out_specs=_VMEM,
        compiler_params=pltpu.CompilerParams(vmem_limit_bytes=vmem_limit),
        cost_estimate=_cost_estimate(dims, n_nodes, n_edges, n_angles,
                                     n_graphs, mlp_hidden, flat, n_graphs * 4),
    )(*flat)
    return out[:, 0]                                         # .squeeze(-1)


# ---------------------------------------------------------------------------
# Deterministic parameter init (synthetic, matches module shapes)
# ---------------------------------------------------------------------------
def init_params(key, input_dim, hidden_dims, mlp_hidden_dim=64):
    def nrm(k, shape, scale=0.1):
        return (scale * jax.random.normal(k, shape)).astype(jnp.float32)

    params = {"layers": []}
    dims = [input_dim] + list(hidden_dims)
    for li in range(len(hidden_dims)):
        in_c, out_c = dims[li], dims[li + 1]
        ks = jax.random.split(jax.random.fold_in(key, li), 12)
        params["layers"].append({
            # edge MLP (Linear(1,32) -> ReLU -> Linear(32, in_c*out_c))
            "ew1": nrm(ks[0], (1, 32)), "eb1": nrm(ks[1], (1, 32)),
            "ew2": nrm(ks[2], (32, in_c * out_c)),
            "eb2": nrm(ks[3], (1, in_c * out_c)),
            # angle MLP (Linear(1,32) -> ReLU -> Linear(32, out_c))
            "aw1": nrm(ks[4], (1, 32)), "ab1": nrm(ks[5], (1, 32)),
            "aw2": nrm(ks[6], (32, out_c)), "ab2": nrm(ks[7], (1, out_c)),
            # BatchNorm1d(out_c), eval-mode parameters
            "bn_gamma": 1.0 + nrm(ks[8], (1, out_c)),
            "bn_beta": nrm(ks[9], (1, out_c)),
            "bn_mean": nrm(ks[10], (1, out_c)),
            "bn_var": 1.0 + jnp.abs(nrm(ks[11], (1, out_c))),
        })
    H = hidden_dims[-1]
    km = jax.random.split(jax.random.fold_in(key, 1000), 4)
    params["mlp"] = {
        # Linear(H+1, mlp_hidden) split into node-feature and edft parts
        "w1x": nrm(km[0], (H, mlp_hidden_dim)),
        "w1e": nrm(km[1], (1, mlp_hidden_dim)),
        "b1": nrm(km[2], (1, mlp_hidden_dim)),
        "w2": nrm(km[3], (mlp_hidden_dim, 1)),
        "b2": jnp.zeros((1, 1), jnp.float32),
    }
    return params


# ---------------------------------------------------------------------------
# Pure-JAX reference (mirrors the PyTorch forward in eval mode, f32)
# ---------------------------------------------------------------------------
def reference_forward(params, x, edge_index, edge_attr, angle_index, angles,
                      batch, edft):
    h = x
    n = x.shape[0]
    for p in params["layers"]:
        in_c = h.shape[1]
        out_c = p["bn_gamma"].shape[1]
        row, col = edge_index[0], edge_index[1]
        eh = jnp.maximum(edge_attr @ p["ew1"] + p["eb1"], 0.0)
        ew = (eh @ p["ew2"] + p["eb2"]).reshape(-1, in_c, out_c)
        msg = jnp.einsum("ei,eio->eo", h[col], ew)
        agg = jnp.zeros((n, out_c)).at[row].add(msg)
        ah = jnp.maximum(angles @ p["aw1"] + p["ab1"], 0.0)
        af = ah @ p["aw2"] + p["ab2"]
        agg = agg + jnp.zeros((n, out_c)).at[angle_index[1]].add(af)
        xn = (agg - p["bn_mean"]) / jnp.sqrt(p["bn_var"] + 1e-5)
        h = jnp.maximum(xn * p["bn_gamma"] + p["bn_beta"], 0.0)
    n_graphs = edft.shape[0]
    oh = (batch[None, :] == jnp.arange(n_graphs)[:, None]).astype(jnp.float32)
    pooled = oh @ h / jnp.maximum(oh.sum(1, keepdims=True), 1.0)
    mp = params["mlp"]
    hid = jnp.maximum(pooled @ mp["w1x"] + edft[:, None] * mp["w1e"] + mp["b1"], 0.0)
    return (hid @ mp["w2"] + mp["b2"])[:, 0]


# ---------------------------------------------------------------------------
if __name__ == "__main__":
    key = jax.random.PRNGKey(0)
    N, E, A, B = 16, 32, 24, 2          # nodes, edges, angles, graphs
    input_dim = 8
    hidden_dims = [16, 16]

    k_x, k_ei, k_ea, k_ai, k_an, k_ed, k_p = jax.random.split(key, 7)
    x = jax.random.normal(k_x, (N, input_dim), dtype=jnp.float32)
    edge_index = jax.random.randint(k_ei, (2, E), 0, N, dtype=jnp.int32)
    edge_attr = jax.random.uniform(k_ea, (E, 1), dtype=jnp.float32) * 3.0
    angle_index = jax.random.randint(k_ai, (3, A), 0, N, dtype=jnp.int32)
    angles = jax.random.uniform(k_an, (A, 1), dtype=jnp.float32) * 3.14159
    batch = jnp.repeat(jnp.arange(B, dtype=jnp.int32), N // B)
    edft = jax.random.normal(k_ed, (B,), dtype=jnp.float32)

    params = init_params(k_p, input_dim, hidden_dims, mlp_hidden_dim=64)

    out = angle_gnn_forward(params, x, edge_index, edge_attr, angle_index,
                            angles, batch, edft)
    out = jax.block_until_ready(out)

    ref = reference_forward(params, x, edge_index, edge_attr, angle_index,
                            angles, batch, edft)
    assert out.shape == (B,)
    # Tolerance loosened vs the f32 reference: matmul operands run in bf16 on
    # the MXU (f32 accumulation); the 0/1 one-hot / repeat matrices are exact.
    assert jnp.allclose(out, ref, atol=3e-2, rtol=3e-2), (out, ref)
    print("KERNEL_OK")
</pallas_src>

<mosaic_0001>
module attributes {stable_mosaic.version = 11 : i64} {
  func.func @_fused_forward_kernel(%arg0: memref<16x8xf32, #tpu.memory_space<vmem>>, %arg1: memref<32x1xi32, #tpu.memory_space<vmem>>, %arg2: memref<1x56xi32, #tpu.memory_space<vmem>>, %arg3: memref<32x1xf32, #tpu.memory_space<vmem>>, %arg4: memref<24x1xf32, #tpu.memory_space<vmem>>, %arg5: memref<2x16xf32, #tpu.memory_space<vmem>>, %arg6: memref<2x1xf32, #tpu.memory_space<vmem>>, %arg7: memref<20x256xf32, #tpu.memory_space<vmem>>, %arg8: memref<32x144xf32, #tpu.memory_space<vmem>>, %arg9: memref<32x272xf32, #tpu.memory_space<vmem>>, %arg10: memref<16x64xf32, #tpu.memory_space<vmem>>, %arg11: memref<2x1xf32, #tpu.memory_space<vmem>>) attributes {dimension_semantics = [], scalar_prefetch = 0 : i64, scratch_operands = 0 : i64, tpu.core_type = #tpu.core_type<tc>} {
    %c0 = arith.constant 0 : index
    %c0_0 = arith.constant 0 : index
    %0 = vector.load %arg1[%c0, %c0_0] : memref<32x1xi32, #tpu.memory_space<vmem>>, vector<32x1xi32>
    %1 = tpu.iota {dimensions = array<i32: 1>} : vector<32x16xi32>
    %2 = vector.broadcast %0 : vector<32x1xi32> to vector<32x16xi32>
    %3 = arith.cmpi eq, %1, %2 : vector<32x16xi32>
    %cst = arith.constant 1.000000e+00 : f32
    %cst_1 = arith.constant 0.000000e+00 : f32
    %4 = vector.broadcast %cst : f32 to vector<32x16xf32>
    %5 = vector.broadcast %cst_1 : f32 to vector<32x16xf32>
    %6 = arith.select %3, %4, %5 : vector<32x16xi1>, vector<32x16xf32>
    %7 = arith.truncf %6 : vector<32x16xf32> to vector<32x16xbf16>
    %c0_2 = arith.constant 0 : index
    %c0_3 = arith.constant 0 : index
    %8 = vector.load %arg2[%c0_2, %c0_3] : memref<1x56xi32, #tpu.memory_space<vmem>>, vector<1x56xi32>
    %9 = tpu.iota {dimensions = array<i32: 0>} : vector<16x56xi32>
    %10 = vector.broadcast %8 : vector<1x56xi32> to vector<16x56xi32>
    %11 = arith.cmpi eq, %9, %10 : vector<16x56xi32>
    %cst_4 = arith.constant 1.000000e+00 : f32
    %cst_5 = arith.constant 0.000000e+00 : f32
    %12 = vector.broadcast %cst_4 : f32 to vector<16x56xf32>
    %13 = vector.broadcast %cst_5 : f32 to vector<16x56xf32>
    %14 = arith.select %11, %12, %13 : vector<16x56xi1>, vector<16x56xf32>
    %15 = arith.truncf %14 : vector<16x56xf32> to vector<16x56xbf16>
    %16 = tpu.iota {dimensions = array<i32: 1>} : vector<8x128xi32>
    %17 = tpu.iota {dimensions = array<i32: 0>} : vector<8x128xi32>
    %c16_i32 = arith.constant 16 : i32
    %18 = vector.broadcast %c16_i32 : i32 to vector<8x128xi32>
    %19 = arith.muli %17, %18 : vector<8x128xi32>
    %20 = arith.cmpi sge, %16, %19 : vector<8x128xi32>
    %c16_i32_6 = arith.constant 16 : i32
    %21 = vector.broadcast %c16_i32_6 : i32 to vector<8x128xi32>
    %22 = arith.muli %17, %21 : vector<8x128xi32>
    %c16_i32_7 = arith.constant 16 : i32
    %23 = vector.broadcast %c16_i32_7 : i32 to vector<8x128xi32>
    %24 = arith.addi %22, %23 : vector<8x128xi32>
    %25 = arith.cmpi slt, %16, %24 : vector<8x128xi32>
    %26 = arith.andi %20, %25 : vector<8x128xi1>
    %cst_8 = arith.constant 1.000000e+00 : f32
    %cst_9 = arith.constant 0.000000e+00 : f32
    %27 = vector.broadcast %cst_8 : f32 to vector<8x128xf32>
    %28 = vector.broadcast %cst_9 : f32 to vector<8x128xf32>
    %29 = arith.select %26, %27, %28 : vector<8x128xi1>, vector<8x128xf32>
    %30 = arith.truncf %29 : vector<8x128xf32> to vector<8x128xbf16>
    %31 = tpu.iota {dimensions = array<i32: 1>} : vector<16x256xi32>
    %32 = tpu.iota {dimensions = array<i32: 0>} : vector<16x256xi32>
    %c16_i32_10 = arith.constant 16 : i32
    %33 = vector.broadcast %c16_i32_10 : i32 to vector<16x256xi32>
    %34 = arith.muli %32, %33 : vector<16x256xi32>
    %35 = arith.cmpi sge, %31, %34 : vector<16x256xi32>
    %c16_i32_11 = arith.constant 16 : i32
    %36 = vector.broadcast %c16_i32_11 : i32 to vector<16x256xi32>
    %37 = arith.muli %32, %36 : vector<16x256xi32>
    %c16_i32_12 = arith.constant 16 : i32
    %38 = vector.broadcast %c16_i32_12 : i32 to vector<16x256xi32>
    %39 = arith.addi %37, %38 : vector<16x256xi32>
    %40 = arith.cmpi slt, %31, %39 : vector<16x256xi32>
    %41 = arith.andi %35, %40 : vector<16x256xi1>
    %cst_13 = arith.constant 1.000000e+00 : f32
    %cst_14 = arith.constant 0.000000e+00 : f32
    %42 = vector.broadcast %cst_13 : f32 to vector<16x256xf32>
    %43 = vector.broadcast %cst_14 : f32 to vector<16x256xf32>
    %44 = arith.select %41, %42, %43 : vector<16x256xi1>, vector<16x256xf32>
    %45 = arith.truncf %44 : vector<16x256xf32> to vector<16x256xbf16>
    %c0_15 = arith.constant 0 : index
    %c0_16 = arith.constant 0 : index
    %46 = vector.load %arg7[%c0_15, %c0_16] : memref<20x256xf32, #tpu.memory_space<vmem>>, vector<20x256xf32>
    %c0_17 = arith.constant 0 : index
    %c0_18 = arith.constant 0 : index
    %47 = vector.load %arg3[%c0_17, %c0_18] : memref<32x1xf32, #tpu.memory_space<vmem>>, vector<32x1xf32>
    %c0_19 = arith.constant 0 : index
    %c0_20 = arith.constant 0 : index
    %48 = vector.load %arg4[%c0_19, %c0_20] : memref<24x1xf32, #tpu.memory_space<vmem>>, vector<24x1xf32>
    %c0_21 = arith.constant 0 : index
    %c0_22 = arith.constant 0 : index
    %49 = vector.load %arg0[%c0_21, %c0_22] : memref<16x8xf32, #tpu.memory_space<vmem>>, vector<16x8xf32>
    %50 = vector.extract_strided_slice %46 {offsets = [0, 0], sizes = [1, 32], strides = [1, 1]} : vector<20x256xf32> to vector<1x32xf32>
    %51 = vector.extract_strided_slice %46 {offsets = [1, 0], sizes = [1, 32], strides = [1, 1]} : vector<20x256xf32> to vector<1x32xf32>
    %52 = vector.extract_strided_slice %46 {offsets = [2, 0], sizes = [1, 32], strides = [1, 1]} : vector<20x256xf32> to vector<1x32xf32>
    %53 = vector.extract_strided_slice %46 {offsets = [3, 0], sizes = [1, 32], strides = [1, 1]} : vector<20x256xf32> to vector<1x32xf32>
    %54 = vector.extract_strided_slice %46 {offsets = [4, 0], sizes = [1, 128], strides = [1, 1]} : vector<20x256xf32> to vector<1x128xf32>
    %55 = vector.extract_strided_slice %46 {offsets = [5, 0], sizes = [1, 16], strides = [1, 1]} : vector<20x256xf32> to vector<1x16xf32>
    %56 = vector.extract_strided_slice %46 {offsets = [6, 0], sizes = [1, 16], strides = [1, 1]} : vector<20x256xf32> to vector<1x16xf32>
    %57 = vector.extract_strided_slice %46 {offsets = [7, 0], sizes = [1, 16], strides = [1, 1]} : vector<20x256xf32> to vector<1x16xf32>
    %c0_23 = arith.constant 0 : index
    %c0_24 = arith.constant 0 : index
    %58 = vector.load %arg8[%c0_23, %c0_24] : memref<32x144xf32, #tpu.memory_space<vmem>>, vector<32x144xf32>
    %59 = vector.extract_strided_slice %58 {offsets = [0, 0], sizes = [32, 128], strides = [1, 1]} : vector<32x144xf32> to vector<32x128xf32>
    %60 = vector.extract_strided_slice %58 {offsets = [0, 128], sizes = [32, 16], strides = [1, 1]} : vector<32x144xf32> to vector<32x16xf32>
    %61 = vector.broadcast %47 : vector<32x1xf32> to vector<32x32xf32>
    %62 = vector.broadcast %50 : vector<1x32xf32> to vector<32x32xf32>
    %63 = arith.mulf %61, %62 : vector<32x32xf32>
    %64 = vector.broadcast %51 : vector<1x32xf32> to vector<32x32xf32>
    %65 = arith.addf %63, %64 : vector<32x32xf32>
    %cst_25 = arith.constant 0.000000e+00 : f32
    %66 = vector.broadcast %cst_25 : f32 to vector<32x32xf32>
    %67 = arith.maximumf %65, %66 : vector<32x32xf32>
    %68 = arith.truncf %67 : vector<32x32xf32> to vector<32x32xbf16>
    %69 = arith.truncf %59 : vector<32x128xf32> to vector<32x128xbf16>
    %cst_26 = arith.constant dense<0.000000e+00> : vector<32x128xf32>
    %70 = tpu.matmul %68, %69, %cst_26 {dimension_numbers = #tpu.dot_dimension_numbers<[1], [0], [0], [1], [0, 0, 1, 1], [], []>} : vector<32x32xbf16>, vector<32x128xbf16>, vector<32x128xf32> -> vector<32x128xf32>
    %71 = vector.broadcast %54 : vector<1x128xf32> to vector<32x128xf32>
    %72 = arith.addf %70, %71 : vector<32x128xf32>
    %73 = arith.truncf %49 : vector<16x8xf32> to vector<16x8xbf16>
    %cst_27 = arith.constant dense<0.000000e+00> : vector<32x8xf32>
    %74 = tpu.matmul %7, %73, %cst_27 {dimension_numbers = #tpu.dot_dimension_numbers<[1], [0], [0], [1], [0, 0, 1, 1], [], []>} : vector<32x16xbf16>, vector<16x8xbf16>, vector<32x8xf32> -> vector<32x8xf32>
    %75 = arith.truncf %74 : vector<32x8xf32> to vector<32x8xbf16>
    %cst_28 = arith.constant dense<0.000000e+00> : vector<32x128xf32>
    %76 = tpu.matmul %75, %30, %cst_28 {dimension_numbers = #tpu.dot_dimension_numbers<[1], [0], [0], [1], [0, 0, 1, 1], [], []>} : vector<32x8xbf16>, vector<8x128xbf16>, vector<32x128xf32> -> vector<32x128xf32>
    %77 = arith.mulf %76, %72 : vector<32x128xf32>
    %c64_i32 = arith.constant 64 : i32
    %78 = tpu.dynamic_rotate %77 by %c64_i32 dim 1 : vector<32x128xf32>, i32 -> vector<32x128xf32>
    %79 = arith.addf %77, %78 : vector<32x128xf32>
    %c96_i32 = arith.constant 96 : i32
    %80 = tpu.dynamic_rotate %79 by %c96_i32 dim 1 : vector<32x128xf32>, i32 -> vector<32x128xf32>
    %81 = arith.addf %79, %80 : vector<32x128xf32>
    %c112_i32 = arith.constant 112 : i32
    %82 = tpu.dynamic_rotate %81 by %c112_i32 dim 1 : vector<32x128xf32>, i32 -> vector<32x128xf32>
    %83 = arith.addf %81, %82 : vector<32x128xf32>
    %84 = vector.extract_strided_slice %83 {offsets = [0, 0], sizes = [32, 16], strides = [1, 1]} : vector<32x128xf32> to vector<32x16xf32>
    %85 = vector.broadcast %48 : vector<24x1xf32> to vector<24x32xf32>
    %86 = vector.broadcast %52 : vector<1x32xf32> to vector<24x32xf32>
    %87 = arith.mulf %85, %86 : vector<24x32xf32>
    %88 = vector.broadcast %53 : vector<1x32xf32> to vector<24x32xf32>
    %89 = arith.addf %87, %88 : vector<24x32xf32>
    %cst_29 = arith.constant 0.000000e+00 : f32
    %90 = vector.broadcast %cst_29 : f32 to vector<24x32xf32>
    %91 = arith.maximumf %89, %90 : vector<24x32xf32>
    %92 = arith.truncf %91 : vector<24x32xf32> to vector<24x32xbf16>
    %93 = arith.truncf %60 : vector<32x16xf32> to vector<32x16xbf16>
    %cst_30 = arith.constant dense<0.000000e+00> : vector<24x16xf32>
    %94 = tpu.matmul %92, %93, %cst_30 {dimension_numbers = #tpu.dot_dimension_numbers<[1], [0], [0], [1], [0, 0, 1, 1], [], []>} : vector<24x32xbf16>, vector<32x16xbf16>, vector<24x16xf32> -> vector<24x16xf32>
    %95 = vector.broadcast %55 : vector<1x16xf32> to vector<24x16xf32>
    %96 = arith.addf %94, %95 : vector<24x16xf32>
    %97 = tpu.concatenate %84, %96 in 0 : vector<32x16xf32>, vector<24x16xf32> -> vector<56x16xf32>
    %98 = arith.truncf %97 : vector<56x16xf32> to vector<56x16xbf16>
    %cst_31 = arith.constant dense<0.000000e+00> : vector<16x16xf32>
    %99 = tpu.matmul %15, %98, %cst_31 {dimension_numbers = #tpu.dot_dimension_numbers<[1], [0], [0], [1], [0, 0, 1, 1], [], []>} : vector<16x56xbf16>, vector<56x16xbf16>, vector<16x16xf32> -> vector<16x16xf32>
    %100 = vector.broadcast %56 : vector<1x16xf32> to vector<16x16xf32>
    %101 = arith.mulf %99, %100 : vector<16x16xf32>
    %102 = vector.broadcast %57 : vector<1x16xf32> to vector<16x16xf32>
    %103 = arith.addf %101, %102 : vector<16x16xf32>
    %cst_32 = arith.constant 0.000000e+00 : f32
    %104 = vector.broadcast %cst_32 : f32 to vector<16x16xf32>
    %105 = arith.maximumf %103, %104 : vector<16x16xf32>
    %106 = vector.extract_strided_slice %46 {offsets = [8, 0], sizes = [1, 32], strides = [1, 1]} : vector<20x256xf32> to vector<1x32xf32>
    %107 = vector.extract_strided_slice %46 {offsets = [9, 0], sizes = [1, 32], strides = [1, 1]} : vector<20x256xf32> to vector<1x32xf32>
    %108 = vector.extract_strided_slice %46 {offsets = [10, 0], sizes = [1, 32], strides = [1, 1]} : vector<20x256xf32> to vector<1x32xf32>
    %109 = vector.extract_strided_slice %46 {offsets = [11, 0], sizes = [1, 32], strides = [1, 1]} : vector<20x256xf32> to vector<1x32xf32>
    %110 = vector.extract_strided_slice %46 {offsets = [12, 0], sizes = [1, 256], strides = [1, 1]} : vector<20x256xf32> to vector<1x256xf32>
    %111 = vector.extract_strided_slice %46 {offsets = [13, 0], sizes = [1, 16], strides = [1, 1]} : vector<20x256xf32> to vector<1x16xf32>
    %112 = vector.extract_strided_slice %46 {offsets = [14, 0], sizes = [1, 16], strides = [1, 1]} : vector<20x256xf32> to vector<1x16xf32>
    %113 = vector.extract_strided_slice %46 {offsets = [15, 0], sizes = [1, 16], strides = [1, 1]} : vector<20x256xf32> to vector<1x16xf32>
    %c0_33 = arith.constant 0 : index
    %c0_34 = arith.constant 0 : index
    %114 = vector.load %arg9[%c0_33, %c0_34] : memref<32x272xf32, #tpu.memory_space<vmem>>, vector<32x272xf32>
    %115 = vector.extract_strided_slice %114 {offsets = [0, 0], sizes = [32, 256], strides = [1, 1]} : vector<32x272xf32> to vector<32x256xf32>
    %116 = vector.extract_strided_slice %114 {offsets = [0, 256], sizes = [32, 16], strides = [1, 1]} : vector<32x272xf32> to vector<32x16xf32>
    %117 = vector.broadcast %47 : vector<32x1xf32> to vector<32x32xf32>
    %118 = vector.broadcast %106 : vector<1x32xf32> to vector<32x32xf32>
    %119 = arith.mulf %117, %118 : vector<32x32xf32>
    %120 = vector.broadcast %107 : vector<1x32xf32> to vector<32x32xf32>
    %121 = arith.addf %119, %120 : vector<32x32xf32>
    %cst_35 = arith.constant 0.000000e+00 : f32
    %122 = vector.broadcast %cst_35 : f32 to vector<32x32xf32>
    %123 = arith.maximumf %121, %122 : vector<32x32xf32>
    %124 = arith.truncf %123 : vector<32x32xf32> to vector<32x32xbf16>
    %125 = arith.truncf %115 : vector<32x256xf32> to vector<32x256xbf16>
    %cst_36 = arith.constant dense<0.000000e+00> : vector<32x256xf32>
    %126 = tpu.matmul %124, %125, %cst_36 {dimension_numbers = #tpu.dot_dimension_numbers<[1], [0], [0], [1], [0, 0, 1, 1], [], []>} : vector<32x32xbf16>, vector<32x256xbf16>, vector<32x256xf32> -> vector<32x256xf32>
    %127 = vector.broadcast %110 : vector<1x256xf32> to vector<32x256xf32>
    %128 = arith.addf %126, %127 : vector<32x256xf32>
    %129 = arith.truncf %105 : vector<16x16xf32> to vector<16x16xbf16>
    %cst_37 = arith.constant dense<0.000000e+00> : vector<32x16xf32>
    %130 = tpu.matmul %7, %129, %cst_37 {dimension_numbers = #tpu.dot_dimension_numbers<[1], [0], [0], [1], [0, 0, 1, 1], [], []>} : vector<32x16xbf16>, vector<16x16xbf16>, vector<32x16xf32> -> vector<32x16xf32>
    %131 = arith.truncf %130 : vector<32x16xf32> to vector<32x16xbf16>
    %cst_38 = arith.constant dense<0.000000e+00> : vector<32x256xf32>
    %132 = tpu.matmul %131, %45, %cst_38 {dimension_numbers = #tpu.dot_dimension_numbers<[1], [0], [0], [1], [0, 0, 1, 1], [], []>} : vector<32x16xbf16>, vector<16x256xbf16>, vector<32x256xf32> -> vector<32x256xf32>
    %133 = arith.mulf %132, %128 : vector<32x256xf32>
    %c128_i32 = arith.constant 128 : i32
    %134 = tpu.dynamic_rotate %133 by %c128_i32 dim 1 : vector<32x256xf32>, i32 -> vector<32x256xf32>
    %135 = arith.addf %133, %134 : vector<32x256xf32>
    %c192_i32 = arith.constant 192 : i32
    %136 = tpu.dynamic_rotate %135 by %c192_i32 dim 1 : vector<32x256xf32>, i32 -> vector<32x256xf32>
    %137 = arith.addf %135, %136 : vector<32x256xf32>
    %c224_i32 = arith.constant 224 : i32
    %138 = tpu.dynamic_rotate %137 by %c224_i32 dim 1 : vector<32x256xf32>, i32 -> vector<32x256xf32>
    %139 = arith.addf %137, %138 : vector<32x256xf32>
    %c240_i32 = arith.constant 240 : i32
    %140 = tpu.dynamic_rotate %139 by %c240_i32 dim 1 : vector<32x256xf32>, i32 -> vector<32x256xf32>
    %141 = arith.addf %139, %140 : vector<32x256xf32>
    %142 = vector.extract_strided_slice %141 {offsets = [0, 0], sizes = [32, 16], strides = [1, 1]} : vector<32x256xf32> to vector<32x16xf32>
    %143 = vector.broadcast %48 : vector<24x1xf32> to vector<24x32xf32>
    %144 = vector.broadcast %108 : vector<1x32xf32> to vector<24x32xf32>
    %145 = arith.mulf %143, %144 : vector<24x32xf32>
    %146 = vector.broadcast %109 : vector<1x32xf32> to vector<24x32xf32>
    %147 = arith.addf %145, %146 : vector<24x32xf32>
    %cst_39 = arith.constant 0.000000e+00 : f32
    %148 = vector.broadcast %cst_39 : f32 to vector<24x32xf32>
    %149 = arith.maximumf %147, %148 : vector<24x32xf32>
    %150 = arith.truncf %149 : vector<24x32xf32> to vector<24x32xbf16>
    %151 = arith.truncf %116 : vector<32x16xf32> to vector<32x16xbf16>
    %cst_40 = arith.constant dense<0.000000e+00> : vector<24x16xf32>
    %152 = tpu.matmul %150, %151, %cst_40 {dimension_numbers = #tpu.dot_dimension_numbers<[1], [0], [0], [1], [0, 0, 1, 1], [], []>} : vector<24x32xbf16>, vector<32x16xbf16>, vector<24x16xf32> -> vector<24x16xf32>
    %153 = vector.broadcast %111 : vector<1x16xf32> to vector<24x16xf32>
    %154 = arith.addf %152, %153 : vector<24x16xf32>
    %155 = tpu.concatenate %142, %154 in 0 : vector<32x16xf32>, vector<24x16xf32> -> vector<56x16xf32>
    %156 = arith.truncf %155 : vector<56x16xf32> to vector<56x16xbf16>
    %cst_41 = arith.constant dense<0.000000e+00> : vector<16x16xf32>
    %157 = tpu.matmul %15, %156, %cst_41 {dimension_numbers = #tpu.dot_dimension_numbers<[1], [0], [0], [1], [0, 0, 1, 1], [], []>} : vector<16x56xbf16>, vector<56x16xbf16>, vector<16x16xf32> -> vector<16x16xf32>
    %158 = vector.broadcast %112 : vector<1x16xf32> to vector<16x16xf32>
    %159 = arith.mulf %157, %158 : vector<16x16xf32>
    %160 = vector.broadcast %113 : vector<1x16xf32> to vector<16x16xf32>
    %161 = arith.addf %159, %160 : vector<16x16xf32>
    %cst_42 = arith.constant 0.000000e+00 : f32
    %162 = vector.broadcast %cst_42 : f32 to vector<16x16xf32>
    %163 = arith.maximumf %161, %162 : vector<16x16xf32>
    %c0_43 = arith.constant 0 : index
    %c0_44 = arith.constant 0 : index
    %164 = vector.load %arg5[%c0_43, %c0_44] : memref<2x16xf32, #tpu.memory_space<vmem>>, vector<2x16xf32>
    %cst_45 = arith.constant dense<0.000000e+00> : vector<2x16xf32>
    %165 = tpu.matmul %164, %163, %cst_45 {dimension_numbers = #tpu.dot_dimension_numbers<[1], [0], [0], [1], [0, 0, 1, 1], [], []>} : vector<2x16xf32>, vector<16x16xf32>, vector<2x16xf32> -> vector<2x16xf32>
    %166 = vector.extract_strided_slice %46 {offsets = [16, 0], sizes = [1, 64], strides = [1, 1]} : vector<20x256xf32> to vector<1x64xf32>
    %167 = vector.extract_strided_slice %46 {offsets = [17, 0], sizes = [1, 64], strides = [1, 1]} : vector<20x256xf32> to vector<1x64xf32>
    %168 = vector.extract_strided_slice %46 {offsets = [18, 0], sizes = [1, 64], strides = [1, 1]} : vector<20x256xf32> to vector<1x64xf32>
    %169 = vector.extract_strided_slice %46 {offsets = [19, 0], sizes = [1, 1], strides = [1, 1]} : vector<20x256xf32> to vector<1x1xf32>
    %c0_46 = arith.constant 0 : index
    %c0_47 = arith.constant 0 : index
    %170 = vector.load %arg10[%c0_46, %c0_47] : memref<16x64xf32, #tpu.memory_space<vmem>>, vector<16x64xf32>
    %cst_48 = arith.constant dense<0.000000e+00> : vector<2x64xf32>
    %171 = tpu.matmul %165, %170, %cst_48 {dimension_numbers = #tpu.dot_dimension_numbers<[1], [0], [0], [1], [0, 0, 1, 1], [], []>} : vector<2x16xf32>, vector<16x64xf32>, vector<2x64xf32> -> vector<2x64xf32>
    %c0_49 = arith.constant 0 : index
    %c0_50 = arith.constant 0 : index
    %172 = vector.load %arg6[%c0_49, %c0_50] : memref<2x1xf32, #tpu.memory_space<vmem>>, vector<2x1xf32>
    %173 = vector.broadcast %172 : vector<2x1xf32> to vector<2x64xf32>
    %174 = vector.broadcast %166 : vector<1x64xf32> to vector<2x64xf32>
    %175 = arith.mulf %173, %174 : vector<2x64xf32>
    %176 = arith.addf %171, %175 : vector<2x64xf32>
    %177 = vector.broadcast %167 : vector<1x64xf32> to vector<2x64xf32>
    %178 = arith.addf %176, %177 : vector<2x64xf32>
    %cst_51 = arith.constant 0.000000e+00 : f32
    %179 = vector.broadcast %cst_51 : f32 to vector<2x64xf32>
    %180 = arith.maximumf %178, %179 : vector<2x64xf32>
    %181 = vector.broadcast %168 : vector<1x64xf32> to vector<2x64xf32>
    %182 = arith.mulf %180, %181 : vector<2x64xf32>
    %cst_52 = arith.constant dense<0.000000e+00> : vector<2xf32>
    %183 = vector.multi_reduction <add>, %182, %cst_52 [1] : vector<2x64xf32> to vector<2xf32>
    %184 = vector.shape_cast %183 : vector<2xf32> to vector<2x1xf32>
    %185 = vector.broadcast %169 : vector<1x1xf32> to vector<2x1xf32>
    %186 = arith.addf %184, %185 : vector<2x1xf32>
    %c0_53 = arith.constant 0 : index
    %c0_54 = arith.constant 0 : index
    %187 = vector.load %arg11[%c0_53, %c0_54] : memref<2x1xf32, #tpu.memory_space<vmem>>, vector<2x1xf32>
    tpu.vector_store %arg11[%c0_53, %c0_54], %186 {strides = array<i32>} : memref<2x1xf32, #tpu.memory_space<vmem>>, vector<2x1xf32>,
    return
  }
}

</mosaic_0001>

<bundles_post_ra>
// kernel: tpu_custom_call.1
= control target key start
LH: loop header
LB: loop body
LE: loop exit
PB: predicated region body
PF: predicated region fallthrough
CT: control target
= control target key end

     0   :  { %16 = vsyncpa [#allocation3], 0  ;;  %s1752_s0 = inlined_call_operand.vmem [shape: f32[16,8], index: 0, kind: input, shape index: {}]   ;;  %s1753_s1 = inlined_call_operand.vmem [shape: s32[32,1], index: 1, kind: input, shape index: {}]   ;;  %s1754_s2 = inlined_call_operand.vmem [shape: s32[1,56], index: 2, kind: input, shape index: {}]   ;;  %s1755_s3 = inlined_call_operand.vmem [shape: f32[32,1], index: 3, kind: input, shape index: {}]   ;;  %s1756_s4 = inlined_call_operand.vmem [shape: f32[24,1], index: 4, kind: input, shape index: {}]   ;;  %s1757_s5 = inlined_call_operand.vmem [shape: f32[2,16], index: 5, kind: input, shape index: {}]   ;;  %s1758_s6 = inlined_call_operand.vmem [shape: f32[2,1], index: 6, kind: input, shape index: {}]   ;;  %s1759_s7 = inlined_call_operand.hbm [shape: f32[20,256], index: 7, kind: input, shape index: {}]   ;;  %s1760_s8 = inlined_call_operand.hbm [shape: f32[32,144], index: 8, kind: input, shape index: {}]   ;;  %s1761_s9 = inlined_call_operand.vmem [shape: f32[32,272], index: 9, kind: input, shape index: {}]   ;;  %s1762_s10 = inlined_call_operand.vmem [shape: f32[16,64], index: 10, kind: input, shape index: {}]   ;;  %s1763_s11 = inlined_call_operand.vmem [shape: f32[2,1], index: 11, kind: output, shape index: {}]  }
   0x1   :  { %17 = vsyncpa [#allocation5], 0  ;;  %s1369_s17 = smov [#allocation2]  }
   0x2   :  { %s37_s18 = sshll.u32 %s1369_s17, 4  ;;  %s38_s18 = int_to_ptr.vmem [resolvable:$true] %s37_s18 }
   0x3   :  { %s1333_s19 = scalar_lea.vmem %s38_s18, 768  ;;  %p1338_p1 = scmp.lt.s32.totalorder %s38_s18, %s38_s18 }
   0x4   :  { %p1334_p0 = scmp.ne.s32.totalorder %s38_s18, %s1333_s19  ;;  %p1339_p2 = scmp.lt.s32.totalorder %s1333_s19, %s1333_s19 }
   0x6   :  { %p1340_p3 = por %p1339_p2, %p1338_p1 }
   0x8   :  { %p1341_p4 = pnand %p1340_p3, %p1334_p0 }
   0xa   :  { %1344 = shalt.err (!%p1341_p4)
}
   0xb   :  { %s1370_s20 = smov 256   ;;  %s1371_s21 = smov 16  }
   0xc   :  { %43 = dma.hbm_to_vmem [thread:$0]  %s1759_s7, 768, %s38_s18, [#allocation3], %s1370_s20, %s1370_s20, %s1371_s21  }
   0xd   :  { %s1372_s24 = smov [#allocation4]  }
   0xe   :  { %s49_s25 = sshll.u32 %s1372_s24, 4  ;;  %s50_s25 = int_to_ptr.vmem [resolvable:$true] %s49_s25 }
   0xf   :  { %s1353_s26 = scalar_lea.vmem %s50_s25, 1024  ;;  %p1358_p6 = scmp.lt.s32.totalorder %s50_s25, %s50_s25 }
  0x10   :  { %p1354_p5 = scmp.ne.s32.totalorder %s50_s25, %s1353_s26  ;;  %p1359_p7 = scmp.lt.s32.totalorder %s1353_s26, %s1353_s26 }
  0x12   :  { %p1360_p8 = por %p1359_p7, %p1358_p6 }
  0x14   :  { %p1361_p9 = pnand %p1360_p8, %p1354_p5 }
  0x16   :  { %1364 = shalt.err (!%p1361_p9)
}
  0x17   :  { %55 = dma.hbm_to_vmem [thread:$0]  %s1760_s8, 1024, %s50_s25, [#allocation5], %s1370_s20, %s1370_s20, %s1371_s21  }
  0x18   :  { %1365 = dma.done.wait [#allocation3], 768  }
  0x19   :  { %1366 = vsyncadd [#allocation3], 4294966528 }
  0x1a   :  { %1367 = dma.done.wait [#allocation5], 1024  }
  0x1b   :  { %1368 = vsyncadd [#allocation5], 4294966272  ;;  %v1373_v0 = vmov 0   ;;  %v69_v1 = vld [vmem:[%s1753_s1 + $0x10] sm:$0xff]  ;;  %v67_v2 = vld [vmem:[%s1753_s1] sm:$0xff]  ;;  %v71_v24 = vlaneseq  ;;  %vm258_vm4 = vcmask 130048  }
  0x1c   :  { %1324 = vset.pattern.permute.xlu1 %v1373_v0  ;;  %1323 = vset.pattern.permute.xlu0 %v1373_v0  ;;  %v70_v3 = vld [vmem:[%s1753_s1 + $0x18] sm:$0xff]  ;;  %v68_v4 = vld [vmem:[%s1753_s1 + $0x8] sm:$0xff]  ;;  %v143_v5 = vld [vmem:[%s1752_s0] sm:$0xff]  ;;  %v1374_v35 = vmov 0.0   ;;  %vm201_vm5 = vcmask 261120   ;;  %vm323_vm9 = vcmask 1043456  }
  0x1d   :  { %80 = vperm.xlu1 %1324, %v69_v1   ;;  %74 = vperm.xlu0 %1323, %v67_v2   ;;  %v144_v6 = vld [vmem:[%s1752_s0 + $0x8] sm:$0xff]  ;;  %v136_v9 = vld [vmem:[%s1755_s3] sm:$0xff]  ;;  %v149_v10 = vld [vmem:[#allocation4 + $0x20] sm:$0xff]  ;;  %v1490_v25 = vshrl.u32 %v71_v24, 7  ;;  %v1492_v26 = vand.u32 127, %v71_v24  ;;  %vm316_vm10 = vcmask 64512  }
  0x1e   :  { %v257_v7 = vpack.c.bf16 %v144_v6, %v143_v5  ;;  %v137_v8 = vld [vmem:[%s1755_s3 + $0x8] sm:$0xff]  ;;  %v151_v11 = vld [vmem:[#allocation4 + $0x30] sm:$0xff]  ;;  %v139_v13 = vld [vmem:[%s1755_s3 + $0x18] sm:$0xff]  ;;  %s1375_s0 = smov 64   ;;  %s1376_s24 = smov 96   ;;  %vm1378_vm11 = vmmov 0  }
  0x1f   :  { %v196_v12 = vpack.c.bf16 %v151_v11, %v149_v10  ;;  %v138_v14 = vld [vmem:[%s1755_s3 + $0x10] sm:$0xff]  ;;  %v147_v16 = vld [vmem:[#allocation4 + $0x10] sm:$0xff]  ;;  %v141_v18 = vld [vmem:[%s1756_s4 + $0x8] sm:$0xff]  ;;  %v1495_v29 = vsub.s32 0, %v1490_v25  ;;  %v1502_v31 = vsub.s32 1, %v1490_v25  ;;  %v1521_v47 = vsub.s32 2, %v1490_v25 }
  0x20   :  { %1239 = vmatprep.subr.bf16.mxu1 %v257_v7  ;;  %v145_v15 = vld [vmem:[#allocation4] sm:$0xff]  ;;  %v140_v19 = vld [vmem:[%s1756_s4] sm:$0xff]  ;;  %v150_v20 = vld [vmem:[#allocation4 + $0x28] sm:$0xff]  ;;  %v1526_v50 = vsub.s32 3, %v1490_v25  ;;  %s1377_s25 = smov 112   ;;  %vm1764_vm14 = vcmask 457728  }
  0x21   :  { %83 = vperm.xlu1 %1324, %v70_v3   ;;  %77 = vperm.xlu0 %1323, %v68_v4   ;;  %v195_v17 = vpack.c.bf16 %v147_v16, %v145_v15  ;;  %v152_v21 = vld [vmem:[#allocation4 + $0x38] sm:$0xff]  ;;  %v142_v23 = vld [vmem:[%s1756_s4 + $0x10] sm:$0xff]  ;;  %v1497_v30 = vld [vmem:[#allocation2] sm:$0xff] }
  0x22   :  { %1240 = vmatpush3.bf16.msra.mxu1 %v257_v7  ;;  %1231 = vmatprep.subr.bf16.mxu0 %v196_v12  ;;  %v1484_v22 = vpack.c.bf16 %v152_v21, %v150_v20  ;;  %v176_v34 = vrot.slane %v1497_v30, %v1495_v29  ;;  %v184_v41 = vrot.slane %v1497_v30, %v1502_v31  ;;  %v1542_v1 = vld [vmem:[#allocation2 + $0x10] sm:$0xff]  ;;  %v146_v4 = vld [vmem:[#allocation4 + $0x8] sm:$0xff]  ;;  %v148_v5 = vld [vmem:[#allocation4 + $0x18] sm:$0xff] }
  0x23   :  { %1232 = vmatpush3.bf16.msra.mxu0 %v196_v12  ;;  %v434_v54 = vrot.slane %v1497_v30, %v1521_v47  ;;  %v441_v59 = vrot.slane %v1497_v30, %v1526_v50  ;;  %v583_v16 = vld [vmem:[%s1761_s9 + $0x38] sm:$0xff] }
  0x24   :  { %1233 = vmatprep.subr.bf16.mxu0 %v195_v17 }
  0x25   :  { %160 = vperm.xlu1 %1324, %v137_v8   ;;  %155 = vperm.xlu0 %1323, %v136_v9   ;;  %v591_v9 = vrot.slane %v1542_v1, %v1495_v29 }
  0x27   :  { %1234 = vmatpush3.bf16.msra.mxu0 %v195_v17  ;;  %v586_v17 = vld [vmem:[%s1761_s9 + $0x50] sm:$0xff] }
  0x28   :  { %1251 = vmatprep.subr.bf16.mxu0 %v1484_v22 }
  0x29   :  { %170 = vperm.xlu1 %1324, %v139_v13   ;;  %165 = vperm.xlu0 %1323, %v138_v14   ;;  %v450_v13 = vpack.c.bf16 %v148_v5, %v146_v4 }
  0x2d   :  { %423 = vperm.xlu1 %1324, %v141_v18   ;;  %418 = vperm.xlu0 %1323, %v140_v19   ;;  %v599_v19 = vrot.slane %v1542_v1, %v1502_v31 }
  0x31   :  { %428 = vperm.xlu0 %1323, %v142_v23  }
  0x98   :  { %v81_v27 = vpop.permute.xlu1 %80  ;;  %v75_v28 = vpop.permute.xlu0 %74 }
  0x99   :  { %vm87_vm0 = vcmp.eq.s32.totalorder %v1492_v26, %v81_v27  ;;  %vm85_vm1 = vcmp.eq.s32.totalorder %v1492_v26, %v75_v28  ;;  %v613_v27 = vpack.c.bf16 %v586_v17, %v583_v16  ;;  %v582_v28 = vld [vmem:[%s1761_s9 + $0x30] sm:$0xff] }
  0x9a   :  { %v91_v36 = vsel %vm87_vm0, 1.0, %v1374_v35  ;;  %v89_v37 = vsel %vm85_vm1, 1.0, %v1374_v35 }
  0x9c   :  { %v84_v32 = vpop.permute.xlu1 %83  ;;  %v78_v33 = vpop.permute.xlu0 %77 }
  0x9d   :  { %vm88_vm2 = vcmp.eq.s32.totalorder %v1492_v26, %v84_v32  ;;  %vm86_vm3 = vcmp.eq.s32.totalorder %v1492_v26, %v78_v33  ;;  %v585_v32 = vld [vmem:[%s1761_s9 + $0x48] sm:$0xff] }
  0x9e   :  { %v92_v38 = vsel %vm88_vm2, 1.0, %v1374_v35  ;;  %v90_v39 = vsel %vm86_vm3, 1.0, %v1374_v35 }
  0x9f   :  { %v1512_v40 = vpack.c.bf16 %v92_v38, %v91_v36  ;;  %v1516_v42 = vpack.c.bf16 %v90_v39, %v89_v37  ;;  %v612_v37 = vpack.c.bf16 %v585_v32, %v582_v28 }
  0xa0   :  { %v161_v43 = vpop.permute.xlu1 %160  ;;  %v156_v44 = vpop.permute.xlu0 %155 }
  0xa1   :  { %v178_v45 = vmul.f32 %v176_v34, %v161_v43  ;;  %v177_v46 = vmul.f32 %v176_v34, %v156_v44  ;;  %1241 = vmatprep.mubr.msk.bf16.mxu1 %vm258_vm4, %v1516_v42  ;;  %v593_v21 = vmul.f32 %v591_v9, %v161_v43  ;;  %v592_v23 = vmul.f32 %v591_v9, %v156_v44  ;;  %v576_v43 = vld [vmem:[%s1761_s9] sm:$0xff]  ;;  %v579_v44 = vld [vmem:[%s1761_s9 + $0x18] sm:$0xff] }
  0xa2   :  { %1242 = vmatmul.mubr.msk.bf16.vlgmr.msra.gmra.mxu1 %vm258_vm4, %v1512_v40 }
  0xa3   :  { %v186_v48 = vadd.f32 %v184_v41, %v178_v45  ;;  %v185_v49 = vadd.f32 %v184_v41, %v177_v46  ;;  %v601_v38 = vadd.f32 %v599_v19, %v593_v21  ;;  %v600_v39 = vadd.f32 %v599_v19, %v592_v23 }
  0xa4   :  { %v1528_v51 = vpop.permute.xlu1 %170  ;;  %v1530_v52 = vpop.permute.xlu0 %165  ;;  %v610_v45 = vpack.c.bf16 %v579_v44, %v576_v43 }
  0xa5   :  { %v180_v53 = vmul.f32 %v176_v34, %v1528_v51  ;;  %v179_v55 = vmul.f32 %v176_v34, %v1530_v52  ;;  %v189_v56 = vmax.f32 %v185_v49, 0.0  ;;  %v190_v57 = vmax.f32 %v186_v48, 0.0  ;;  %v577_v34 = vld [vmem:[%s1761_s9 + $0x8] sm:$0xff] }
  0xa6   :  { %v605_v46 = vmax.f32 %v601_v38, 0.0  ;;  %v604_v48 = vmax.f32 %v600_v39, 0.0  ;;  %v595_v49 = vmul.f32 %v591_v9, %v1528_v51  ;;  %v1590_v51 = vmul.u32 16, %v1490_v25 }
  0xa7   :  { %v188_v58 = vadd.f32 %v184_v41, %v180_v53  ;;  %v187_v60 = vadd.f32 %v184_v41, %v179_v55  ;;  %v193_v63 = vpack.c.bf16 %v190_v57, %v189_v56  ;;  %v594_v53 = vmul.f32 %v591_v9, %v1530_v52 }
  0xa8   :  { %v1538_v61 = vpop.permute.xlu1 %423  ;;  %v1540_v62 = vpop.permute.xlu0 %418  ;;  %v603_v55 = vadd.f32 %v599_v19, %v595_v49  ;;  %v1593_v52 = vadd.s32 16, %v1590_v51  ;;  %vm109_vm6 = vcmp.ge.s32.totalorder %v1492_v26, %v1590_v51 }
  0xa9   :  { %v192_v2 = vmax.f32 %v188_v58, 0.0  ;;  %v436_v3 = vmul.f32 %v434_v54, %v1538_v61  ;;  %v191_v6 = vmax.f32 %v187_v60, 0.0  ;;  %v435_v7 = vmul.f32 %v434_v54, %v1540_v62  ;;  %1235 = vmatprep.mubr.msk.bf16.mxu0 %vm201_vm5, %v193_v63 }
  0xaa   :  { %v602_v56 = vadd.f32 %v599_v19, %v594_v53  ;;  %v607_v57 = vmax.f32 %v603_v55, 0.0  ;;  %vm111_vm7 = vcmp.lt.s32.totalorder %v1492_v26, %v1593_v52 }
  0xab   :  { %v443_v8 = vadd.f32 %v441_v59, %v436_v3  ;;  %v194_v10 = vpack.c.bf16 %v192_v2, %v191_v6  ;;  %v442_v11 = vadd.f32 %v441_v59, %v435_v7  ;;  %vm1599_vm8 = vmand %vm109_vm6, %vm111_vm7 }
  0xac   :  { %v1549_v12 = vpop.permute.xlu0 %428  ;;  %v606_v58 = vmax.f32 %v602_v56, 0.0  ;;  %v113_v63 = vsel %vm1599_vm8, 1.0, %v1374_v35 }
  0xad   :  { %v446_v14 = vmax.f32 %v443_v8, 0.0  ;;  %v437_v15 = vmul.f32 %v434_v54, %v1549_v12  ;;  %v445_v18 = vmax.f32 %v442_v11, 0.0  ;;  %1236 = vmatmul.mubr.msk.bf16.vlgmr.msra.gmra.mxu0 %vm201_vm5, %v194_v10  ;;  %v608_v54 = vpack.c.bf16 %v605_v46, %v604_v48 }
  0xae   :  { %1252 = vmatpush3.bf16.msra.mxu0 %v1484_v22  ;;  %v580_v22 = vld [vmem:[%s1761_s9 + $0x20] sm:$0xff]  ;;  %v114_v2 = vpack.c.bf16 %v113_v63, %v113_v63  ;;  %v454_v11 = vsub.s32 5, %v1490_v25 }
  0xaf   :  { %v444_v20 = vadd.f32 %v441_v59, %v437_v15  ;;  %v448_v24 = vpack.c.bf16 %v446_v14, %v445_v18  ;;  %1253 = vmatprep.subr.bf16.mxu0 %v450_v13  ;;  %v611_v41 = vpack.c.bf16 %v580_v22, %v577_v34  ;;  %v609_v59 = vpack.c.bf16 %v607_v57, %v606_v58 }
  0xb0   :  { %1311 = vmatprep.subr.msk.bf16.mxu1 %vm323_vm9, %v114_v2  ;;  %v325_v3 = vsel %vm323_vm9, %v114_v2, 0  ;;  %v455_v15 = vrot.slane %v1497_v30, %v454_v11 }
  0xb1   :  { %v447_v33 = vmax.f32 %v444_v20, 0.0  ;;  %1255 = vmatprep.mubr.msk.bf16.mxu0 %vm201_vm5, %v448_v24  ;;  %1246 = vmatpush3.bf16.msra.mxu1 %v325_v3 }
  0xb2   :  { %1254 = vmatpush3.bf16.msra.mxu0 %v450_v13  ;;  %1259 = vmatprep.subr.bf16.mxu1 %v1374_v35 }
  0xb3   :  { %v449_v36 = vpack.c.bf16 %v447_v33, %v447_v33  ;;  %640 = vmatprep.subr.bf16.mxu0 %v613_v27  ;;  %v1617_v33 = vsub.s32 4, %v1490_v25 }
  0xb5   :  { %1256 = vmatmul.mubr.msk.bf16.vlgmr.msra.gmra.mxu0 %vm201_vm5, %v449_v36  ;;  %v200_v34 = vrot.slane %v1497_v30, %v1617_v33 }
  0xb6   :  { %641 = vmatpush1.bf16.msra.mxu0 %v612_v37  ;;  %660 = vmatprep.mubr.bf16.mxu0 %v1373_v0 }
  0xb7   :  { %642 = vmatprep.subr.bf16.mxu0 %v611_v41 }
  0xba   :  { %643 = vmatpush1.bf16.msra.mxu0 %v610_v45 }
  0xbd   :  { %1179 = vmatmul.mubr.msk.bf16.vlgmr.msra.gmra.mxu0 %vm201_vm5, %v608_v54 }
  0xbe   :  { %670 = vmatprep.mubr.bf16.mxu0 %v1373_v0 }
  0xc5   :  { %1180 = vmatmul.mubr.msk.bf16.gmra.mxu0 %vm201_vm5, %v609_v59 }
  0xc6   :  { %771 = vmatprep.mubr.bf16.mxu0 %v1373_v0 }
 0x162   :  { %v1243_v4 = vpop.f32.mrf.mxu1 }
 0x164   :  { %v299_v5 = vpop.f32.mrf.mxu1 }
 0x166   :  { %v1244_v6 = vpop.f32.mrf.mxu1 }
 0x167   :  { %v315_v9 = vpack.c.bf16 %v1244_v6, %v1243_v4 }
 0x168   :  { %v302_v7 = vpop.f32.mrf.mxu1 }
 0x169   :  { %v314_v8 = vpack.c.bf16 %v302_v7, %v299_v5 }
 0x16b   :  { %1247 = vmatprep.mubr.msk.bf16.mxu1 %vm316_vm10, %v314_v8 }
 0x16c   :  { %1248 = vmatmul.mubr.msk.bf16.vlgmr.msra.gmra.mxu1 %vm316_vm10, %v315_v9 }
 0x16d   :  { %v1237_v10 = vpop.f32.mrf.mxu0  ;;  %1267 = vmatprep.mubr.msk.bf16.mxu1 %vm1378_vm11, %v1374_v35 }
 0x16e   :  { %v251_v22 = vadd.f32 %v1237_v10, %v200_v34 }
 0x16f   :  { %v242_v13 = vpop.f32.mrf.mxu0 }
 0x170   :  { %v243_v39 = vadd.f32 %v242_v13, %v200_v34  ;;  %v98_v13 = vadd.s32 8, %v1490_v25 }
 0x171   :  { %v1238_v14 = vpop.f32.mrf.mxu0 }
 0x172   :  { %v254_v41 = vadd.f32 %v1238_v14, %v200_v34  ;;  %v1169_v14 = vld [vmem:[%s1754_s2] ss:$0 sm:$0xff] }
 0x173   :  { %v245_v16 = vpop.f32.mrf.mxu0  ;;  %vm103_vm12 = vcmp.eq.s32.totalorder %v1490_v25, %v1169_v14  ;;  %vm104_vm13 = vcmp.eq.s32.totalorder %v98_v13, %v1169_v14 }
 0x174   :  { %v246_v48 = vadd.f32 %v245_v16, %v200_v34  ;;  %v115_v34 = vadd.s32 128, %v1492_v26 }
 0x175   :  { %v1257_v17 = vpop.f32.mrf.mxu0 }
 0x176   :  { %v505_v18 = vadd.f32 %v1257_v17, %v455_v15  ;;  %vm117_vm15 = vcmp.ge.s32.totalorder %v115_v34, %v1590_v51  ;;  %vm121_vm1 = vcmp.lt.s32.totalorder %v115_v34, %v1593_v52  ;;  %v570_v52 = vsub.s32 7, %v1490_v25 }
 0x177   :  { %v496_v19 = vpop.f32.mrf.mxu0  ;;  %vm124_vm2 = vmand %vm117_vm15, %vm121_vm1 }
 0x178   :  { %v513_v20 = vpack.c.bf16 %v505_v18, %v505_v18  ;;  %v497_v27 = vadd.f32 %v496_v19, %v455_v15  ;;  %v571_v60 = vrot.slane %v1497_v30, %v570_v52 }
 0x179   :  { %v1258_v21 = vpop.f32.mrf.mxu0 }
 0x17a   :  { %v519_v23 = vsel %vm323_vm9, %v513_v20, 0 }
 0x17b   :  { %v499_v24 = vpop.f32.mrf.mxu0  ;;  %1260 = vmatpush3.bf16.msra.mxu1 %v519_v23 }
 0x17c   :  { %v500_v28 = vadd.f32 %v499_v24, %v455_v15  ;;  %1261 = vmatprep.subr.bf16.mxu1 %v1374_v35  ;;  %v105_v24 = vsel %vm103_vm12, 1.0, %v1374_v35 }
 0x17e   :  { %v512_v32 = vpack.c.bf16 %v500_v28, %v497_v27  ;;  %v106_v27 = vsel %vm104_vm13, 1.0, %v1374_v35 }
 0x180   :  { %1262 = vmatpush3.bf16.msra.mxu1 %v512_v32  ;;  %v1643_v32 = vpack.c.bf16 %v106_v27, %v105_v24 }
 0x181   :  { %1263 = vmatprep.subr.bf16.mxu1 %v1374_v35 }
 0x22c   :  { %v1249_v36 = vpop.f32.mrf.mxu1 }
 0x22d   :  { %v378_v37 = vmul.f32 %v1249_v36, %v251_v22  ;;  %v116_v22 = vmul.u32 16, %v98_v13 }
 0x22e   :  { %v361_v38 = vpop.f32.mrf.mxu1 }
 0x22f   :  { %384 = vrot.lane.b32.xlu1 %v378_v37, %s1375_s0  ;;  %v376_v44 = vmul.f32 %v361_v38, %v243_v39  ;;  %vm119_vm0 = vcmp.ge.s32.totalorder %v115_v34, %v116_v22  ;;  %v120_v36 = vadd.s32 16, %v116_v22  ;;  %vm118_vm6 = vcmp.ge.s32.totalorder %v1492_v26, %v116_v22 }
 0x230   :  { %v1250_v43 = vpop.f32.mrf.mxu1 }
 0x231   :  { %v379_v45 = vmul.f32 %v1250_v43, %v254_v41  ;;  %vm123_vm3 = vcmp.lt.s32.totalorder %v115_v34, %v120_v36  ;;  %vm122_vm7 = vcmp.lt.s32.totalorder %v1492_v26, %v120_v36  ;;  %v843_v26 = vrot.slane %v1542_v1, %v1521_v47 }
 0x232   :  { %v364_v46 = vpop.f32.mrf.mxu1  ;;  %vm126_vm10 = vmand %vm119_vm0, %vm123_vm3  ;;  %v850_v43 = vrot.slane %v1542_v1, %v1526_v50 }
 0x233   :  { %386 = vrot.lane.b32.xlu0 %v379_v45, %s1375_s0  ;;  %380 = vrot.lane.b32.xlu1 %v376_v44, %s1375_s0  ;;  %v377_v49 = vmul.f32 %v364_v46, %v246_v48  ;;  %vm1183_vm12 = vmpackc.low %vm126_vm10, %vm124_vm2 }
 0x234   :  { %vm125_vm13 = vmand %vm118_vm6, %vm122_vm7 }
 0x237   :  { %382 = vrot.lane.b32.xlu0 %v377_v49, %s1375_s0 }
 0x2a1   :  { %v385_v53 = vpop.permute.xlu1 %384 }
 0x2a2   :  { %v390_v54 = vadd.f32 %v385_v53, %v378_v37  ;;  %v1379_v37 = vmov 1.0|1.0  }
 0x2a3   :  { %1184 = vmatprep.subr.msk.bf16.mxu0 %vm1183_vm12, %v1379_v37 }
 0x2a4   :  { %396 = vrot.lane.b32.xlu1 %v390_v54, %s1376_s24 }
 0x2a5   :  { %v381_v55 = vpop.permute.xlu1 %380  ;;  %v387_v56 = vpop.permute.xlu0 %386 }
 0x2a6   :  { %v388_v57 = vadd.f32 %v381_v55, %v376_v44  ;;  %v391_v58 = vadd.f32 %v387_v56, %v379_v45  ;;  %v845_v44 = vmul.f32 %v843_v26, %v1538_v61  ;;  %v844_v45 = vmul.f32 %v843_v26, %v1540_v62 }
 0x2a7   :  { %v846_v61 = vmul.f32 %v843_v26, %v1549_v12 }
 0x2a8   :  { %392 = vrot.lane.b32.xlu1 %v388_v57, %s1376_s24  ;;  %398 = vrot.lane.b32.xlu0 %v391_v58, %s1376_s24  ;;  %v852_v55 = vadd.f32 %v850_v43, %v845_v44  ;;  %v851_v56 = vadd.f32 %v850_v43, %v844_v45 }
 0x2a9   :  { %v383_v59 = vpop.permute.xlu0 %382 }
 0x2aa   :  { %v389_v63 = vadd.f32 %v383_v59, %v377_v49 }
 0x2ac   :  { %394 = vrot.lane.b32.xlu0 %v389_v63, %s1376_s24 }
 0x316   :  { %v397_v2 = vpop.permute.xlu1 %396 }
 0x317   :  { %v402_v3 = vadd.f32 %v397_v2, %v390_v54  ;;  %v855_v2 = vmax.f32 %v852_v55, 0.0 }
 0x319   :  { %408 = vrot.lane.b32.xlu1 %v402_v3, %s1377_s25 }
 0x31a   :  { %v393_v4 = vpop.permute.xlu1 %392  ;;  %v399_v5 = vpop.permute.xlu0 %398 }
 0x31b   :  { %v400_v6 = vadd.f32 %v393_v4, %v388_v57  ;;  %v403_v7 = vadd.f32 %v399_v5, %v391_v58  ;;  %v584_v57 = vld [vmem:[%s1761_s9 + $0x40] sm:$0xff]  ;;  %v578_v4 = vld [vmem:[%s1761_s9 + $0x10] sm:$0xff]  ;;  %v581_v5 = vld [vmem:[%s1761_s9 + $0x28] sm:$0xff] }
 0x31d   :  { %404 = vrot.lane.b32.xlu1 %v400_v6, %s1377_s25  ;;  %410 = vrot.lane.b32.xlu0 %v403_v7, %s1377_s25 }
 0x31e   :  { %v395_v8 = vpop.permute.xlu0 %394 }
 0x31f   :  { %v401_v9 = vadd.f32 %v395_v8, %v389_v63 }
 0x321   :  { %406 = vrot.lane.b32.xlu0 %v401_v9, %s1377_s25 }
 0x38b   :  { %v409_v10 = vpop.permute.xlu1 %408 }
 0x38c   :  { %v414_v16 = vadd.f32 %v409_v10, %v402_v3  ;;  %v854_v3 = vmax.f32 %v851_v56, 0.0 }
 0x38e   :  { %v857_v8 = vpack.c.bf16 %v855_v2, %v854_v3 }
 0x38f   :  { %v411_v15 = vpop.permute.xlu0 %410  ;;  %v405_v18 = vpop.permute.xlu1 %404 }
 0x390   :  { %v415_v17 = vadd.f32 %v411_v15, %v403_v7  ;;  %v412_v21 = vadd.f32 %v405_v18, %v400_v6  ;;  %v853_v6 = vadd.f32 %v850_v43, %v846_v61  ;;  %v859_v7 = vpack.c.bf16 %v581_v5, %v578_v4  ;;  %v134_v43 = vld [vmem:[#allocation2 + $0x18] sm:$0xff] }
 0x392   :  { %v511_v19 = vpack.c.bf16 %v415_v17, %v414_v16  ;;  %v856_v12 = vmax.f32 %v853_v6, 0.0 }
 0x393   :  { %v407_v20 = vpop.permute.xlu0 %406 }
 0x394   :  { %v413_v23 = vadd.f32 %v407_v20, %v401_v9  ;;  %1264 = vmatpush3.bf16.msra.mxu1 %v511_v19  ;;  %v858_v9 = vpack.c.bf16 %v856_v12, %v856_v12 }
 0x395   :  { %1265 = vmatprep.subr.bf16.mxu1 %v1374_v35 }
 0x396   :  { %v510_v28 = vpack.c.bf16 %v413_v23, %v412_v21 }
 0x398   :  { %1266 = vmatpush3.bf16.msra.mxu1 %v510_v28 }
 0x39b   :  { %1268 = vmatmul.mubr.msk.bf16.vlgmr.msra.gmra.mxu1 %vm1764_vm14, %v1643_v32  ;;  %vm1185_vm14 = vmpackc.low %vm125_vm13, %vm1599_vm8  ;;  %vm1152_vm8 = vcmask 517120  }
 0x39c   :  { %1273 = vmatprep.mubr.msk.bf16.mxu1 %vm258_vm4, %v1516_v42  ;;  %1186 = vmatpush1.bf16.msk.msra.mxu0 %vm1185_vm14, %v1379_v37  ;;  %v564_v42 = vsub.s32 6, %v1490_v25  ;;  %v1056_v25 = vld [vmem:[%s1762_s10 + $0x8] sm:$0xff] }
 0x39d   :  { %1285 = vmatprep.subr.bf16.mxu0 %v1374_v35 }
 0x39e   :  { %v565_v51 = vrot.slane %v1497_v30, %v564_v42  ;;  %v587_v30 = vld [vmem:[%s1761_s9 + $0x58] sm:$0xff] }
 0x39f   :  { %v860_v63 = vpack.c.bf16 %v587_v30, %v584_v57 }
 0x45b   :  { %v555_v38 = vpop.f32.mrf.mxu1 }
 0x45c   :  { %v566_v39 = vmul.f32 %v565_v51, %v555_v38 }
 0x45d   :  { %v1269_v41 = vpop.f32.mrf.mxu1 }
 0x45e   :  { %v572_v48 = vadd.f32 %v571_v60, %v566_v39 }
 0x45f   :  { %v558_v46 = vpop.f32.mrf.mxu1 }
 0x460   :  { %v567_v49 = vmul.f32 %v565_v51, %v558_v46  ;;  %v574_v58 = vmax.f32 %v572_v48, 0.0  ;;  %v617_v46 = vrot.slane %v1542_v1, %v1617_v33  ;;  %v621_v48 = vrot.slane %v134_v43, %v1617_v33 }
 0x461   :  { %v1270_v53 = vpop.f32.mrf.mxu1 }
 0x462   :  { %v573_v54 = vadd.f32 %v571_v60, %v567_v49 }
 0x464   :  { %v575_v59 = vmax.f32 %v573_v54, 0.0 }
 0x466   :  { %v681_v62 = vpack.c.bf16 %v575_v59, %v574_v58 }
 0x468   :  { %1271 = vmatprep.subr.bf16.mxu1 %v681_v62 }
 0x469   :  { %1272 = vmatpush3.bf16.msra.mxu1 %v681_v62 }
 0x46a   :  { %1277 = vmatprep.subr.bf16.mxu1 %v860_v63 }
 0x46c   :  { %1274 = vmatmul.mubr.msk.bf16.vlgmr.msra.gmra.mxu1 %vm258_vm4, %v1512_v40  ;;  %v864_v40 = vrot.slane %v1542_v1, %v454_v11 }
 0x46d   :  { %1278 = vmatpush3.bf16.msra.mxu1 %v860_v63  ;;  %1281 = vmatprep.mubr.msk.bf16.mxu1 %vm201_vm5, %v857_v8 }
 0x46e   :  { %1279 = vmatprep.subr.bf16.mxu1 %v859_v7 }
 0x471   :  { %1280 = vmatpush3.bf16.msra.mxu1 %v859_v7 }
 0x472   :  { %1297 = vmatprep.subr.mxu1 %v1374_v35 }
 0x474   :  { %1282 = vmatmul.mubr.msk.bf16.vlgmr.msra.gmra.mxu1 %vm201_vm5, %v858_v9  ;;  %vm1767_vm5 = vcmask 457728  }
 0x475   :  { %1301 = vmatprep.mubr.msk.f32.mxu1 %vm1378_vm11, %v1374_v35 }
 0x52c   :  { %v1275_v10 = vpop.f32.mrf.mxu1 }
 0x52e   :  { %v716_v13 = vpop.f32.mrf.mxu1 }
 0x530   :  { %v1276_v14 = vpop.f32.mrf.mxu1 }
 0x531   :  { %v732_v27 = vpack.c.bf16 %v1276_v14, %v1275_v10 }
 0x532   :  { %v719_v15 = vpop.f32.mrf.mxu1 }
 0x533   :  { %v731_v16 = vpack.c.bf16 %v719_v15, %v716_v13 }
 0x534   :  { %v1283_v17 = vpop.f32.mrf.mxu1 }
 0x535   :  { %v914_v18 = vadd.f32 %v1283_v17, %v864_v40  ;;  %1187 = vmatmul.mubr.msk.bf16.vlgmr.msra.gmra.mxu0 %vm258_vm4, %v731_v16 }
 0x536   :  { %v905_v19 = vpop.f32.mrf.mxu1  ;;  %781 = vmatprep.mubr.bf16.mxu0 %v1373_v0  ;;  %v662_v0 = vpop.f32.mrf.mxu0 }
 0x537   :  { %v922_v20 = vpack.c.bf16 %v914_v18, %v914_v18  ;;  %v906_v28 = vadd.f32 %v905_v19, %v864_v40  ;;  %v663_v58 = vadd.f32 %v662_v0, %v617_v46  ;;  %v1057_v0 = vld [vmem:[%s1758_s6] sm:$0x3] }
 0x538   :  { %v1284_v21 = vpop.f32.mrf.mxu1  ;;  %v664_v22 = vpop.f32.mrf.mxu0 }
 0x539   :  { %v924_v23 = vsel %vm323_vm9, %v922_v20, 0  ;;  %v665_v56 = vadd.f32 %v664_v22, %v621_v48 }
 0x53a   :  { %v908_v24 = vpop.f32.mrf.mxu1  ;;  %1286 = vmatpush3.bf16.msra.mxu0 %v924_v23  ;;  %v666_v36 = vpop.f32.mrf.mxu0 }
 0x53b   :  { %v909_v34 = vadd.f32 %v908_v24, %v864_v40  ;;  %1287 = vmatprep.subr.bf16.mxu0 %v1374_v35  ;;  %v667_v33 = vadd.f32 %v666_v36, %v617_v46 }
 0x53c   :  { %v668_v37 = vpop.f32.mrf.mxu0 }
 0x53d   :  { %v921_v11 = vpack.c.bf16 %v909_v34, %v906_v28  ;;  %1188 = vmatmul.mubr.msk.bf16.gmra.mxu0 %vm258_vm4, %v732_v27  ;;  %v669_v4 = vadd.f32 %v668_v37, %v621_v48 }
 0x53e   :  { %1293 = vmatprep.mubr.msk.bf16.mxu0 %vm1378_vm11, %v1374_v35  ;;  %v672_v51 = vpop.f32.mrf.mxu0 }
 0x53f   :  { %1288 = vmatpush3.bf16.msra.mxu0 %v921_v11  ;;  %v673_v53 = vadd.f32 %v672_v51, %v617_v46 }
 0x540   :  { %1289 = vmatprep.subr.bf16.mxu0 %v1374_v35  ;;  %v674_v26 = vpop.f32.mrf.mxu0 }
 0x541   :  { %v675_v54 = vadd.f32 %v674_v26, %v621_v48 }
 0x542   :  { %v676_v38 = vpop.f32.mrf.mxu0 }
 0x543   :  { %v677_v61 = vadd.f32 %v676_v38, %v617_v46 }
 0x544   :  { %v678_v39 = vpop.f32.mrf.mxu0 }
 0x545   :  { %v679_v62 = vadd.f32 %v678_v39, %v621_v48 }
 0x5f5   :  { %v773_v60 = vpop.f32.mrf.mxu0 }
 0x5f6   :  { %v792_v5 = vmul.f32 %v773_v60, %v663_v58 }
 0x5f7   :  { %v775_v41 = vpop.f32.mrf.mxu0 }
 0x5f8   :  { %v793_v63 = vmul.f32 %v775_v41, %v665_v56 }
 0x5f9   :  { %v777_v44 = vpop.f32.mrf.mxu0 }
 0x5fa   :  { %v800_v8 = vadd.f32 %v793_v63, %v792_v5  ;;  %v794_v10 = vmul.f32 %v777_v44, %v667_v33 }
 0x5fb   :  { %v779_v45 = vpop.f32.mrf.mxu0 }
 0x5fc   :  { %v795_v12 = vmul.f32 %v779_v45, %v669_v4  ;;  %v970_v45 = vrot.slane %v1542_v1, %v564_v42 }
 0x5fd   :  { %v783_v49 = vpop.f32.mrf.mxu0 }
 0x5fe   :  { %v796_v57 = vmul.f32 %v783_v49, %v673_v53  ;;  %v801_v13 = vadd.f32 %v795_v12, %v794_v10  ;;  %v976_v53 = vrot.slane %v1542_v1, %v570_v52  ;;  %v1055_v1 = vld [vmem:[%s1762_s10] sm:$0xff] }
 0x5ff   :  { %v785_v55 = vpop.f32.mrf.mxu0 }
 0x600   :  { %v797_v30 = vmul.f32 %v785_v55, %v675_v54 }
 0x601   :  { %v787_v59 = vpop.f32.mrf.mxu0 }
 0x602   :  { %v802_v2 = vadd.f32 %v797_v30, %v796_v57  ;;  %v798_v6 = vmul.f32 %v787_v59, %v677_v61  ;;  %v135_v61 = vld [vmem:[#allocation2 + $0x20] sm:$0xf] }
 0x603   :  { %v789_v3 = vpop.f32.mrf.mxu0 }
 0x604   :  { %v799_v7 = vmul.f32 %v789_v3, %v679_v62  ;;  %808 = vrot.lane.b32.xlu1 %v802_v2, %s1375_s0  ;;  %v1066_v62 = vrot.slane %v135_v61, %v1495_v29  ;;  %v1144_v3 = vrot.slane %v135_v61, %v1502_v31 }
 0x606   :  { %v803_v9 = vadd.f32 %v799_v7, %v798_v6  ;;  %v1150_v7 = vrot.slane %v135_v61, %v1521_v47 }
 0x608   :  { %804 = vrot.lane.b32.xlu1 %v800_v8, %s1375_s0  ;;  %810 = vrot.lane.b32.xlu0 %v803_v9, %s1375_s0 }
 0x60c   :  { %806 = vrot.lane.b32.xlu0 %v801_v13, %s1375_s0 }
 0x676   :  { %v809_v14 = vpop.permute.xlu1 %808 }
 0x677   :  { %v814_v40 = vadd.f32 %v809_v14, %v802_v2 }
 0x679   :  { %820 = vrot.lane.b32.xlu1 %v814_v40, %s1376_s24 }
 0x67a   :  { %v805_v15 = vpop.permute.xlu1 %804  ;;  %v811_v16 = vpop.permute.xlu0 %810 }
 0x67b   :  { %v812_v17 = vadd.f32 %v805_v15, %v800_v8  ;;  %v815_v18 = vadd.f32 %v811_v16, %v803_v9  ;;  %v1159_v9 = vrot.slane %v135_v61, %v1526_v50 }
 0x67d   :  { %816 = vrot.lane.b32.xlu1 %v812_v17, %s1376_s24  ;;  %822 = vrot.lane.b32.xlu0 %v815_v18, %s1376_s24 }
 0x67e   :  { %v807_v19 = vpop.permute.xlu0 %806 }
 0x67f   :  { %v813_v20 = vadd.f32 %v807_v19, %v801_v13 }
 0x681   :  { %818 = vrot.lane.b32.xlu0 %v813_v20, %s1376_s24 }
 0x6eb   :  { %v821_v21 = vpop.permute.xlu1 %820 }
 0x6ec   :  { %v826_v23 = vadd.f32 %v821_v21, %v814_v40 }
 0x6ee   :  { %832 = vrot.lane.b32.xlu1 %v826_v23, %s1377_s25 }
 0x6ef   :  { %v817_v24 = vpop.permute.xlu1 %816  ;;  %v823_v27 = vpop.permute.xlu0 %822 }
 0x6f0   :  { %v824_v28 = vadd.f32 %v817_v24, %v812_v17  ;;  %v827_v34 = vadd.f32 %v823_v27, %v815_v18 }
 0x6f2   :  { %828 = vrot.lane.b32.xlu1 %v824_v28, %s1377_s25  ;;  %834 = vrot.lane.b32.xlu0 %v827_v34, %s1377_s25 }
 0x6f3   :  { %v819_v11 = vpop.permute.xlu0 %818 }
 0x6f4   :  { %v825_v22 = vadd.f32 %v819_v11, %v813_v20 }
 0x6f6   :  { %1060 = vperm.xlu1 %1324, %v1057_v0   ;;  %830 = vrot.lane.b32.xlu0 %v825_v22, %s1377_s25 }
 0x760   :  { %v833_v36 = vpop.permute.xlu1 %832 }
 0x761   :  { %v838_v51 = vadd.f32 %v833_v36, %v826_v23 }
 0x764   :  { %v835_v37 = vpop.permute.xlu0 %834  ;;  %v829_v38 = vpop.permute.xlu1 %828 }
 0x765   :  { %v839_v26 = vadd.f32 %v835_v37, %v827_v34  ;;  %v836_v41 = vadd.f32 %v829_v38, %v824_v28 }
 0x767   :  { %v920_v39 = vpack.c.bf16 %v839_v26, %v838_v51 }
 0x768   :  { %v831_v60 = vpop.permute.xlu0 %830 }
 0x769   :  { %v837_v43 = vadd.f32 %v831_v60, %v825_v22  ;;  %1290 = vmatpush3.bf16.msra.mxu0 %v920_v39 }
 0x76a   :  { %1291 = vmatprep.subr.bf16.mxu0 %v1374_v35 }
 0x76b   :  { %v919_v44 = vpack.c.bf16 %v837_v43, %v836_v41 }
 0x76d   :  { %1292 = vmatpush3.bf16.msra.mxu0 %v919_v44 }
 0x770   :  { %1294 = vmatmul.mubr.msk.bf16.vlgmr.msra.gmra.mxu0 %vm1767_vm5, %v1643_v32  ;;  %v981_v32 = vld [vmem:[%s1757_s5] sm:$0x3] }
 0x771   :  { %v1061_v63 = vpop.permute.xlu1 %1060 }
 0x772   :  { %v1067_v2 = vmul.f32 %v1066_v62, %v1061_v63 }
 0x830   :  { %v960_v46 = vpop.f32.mrf.mxu0 }
 0x831   :  { %v971_v49 = vmul.f32 %v970_v45, %v960_v46 }
 0x832   :  { %v1295_v48 = vpop.f32.mrf.mxu0 }
 0x833   :  { %v977_v57 = vadd.f32 %v976_v53, %v971_v49 }
 0x834   :  { %v963_v54 = vpop.f32.mrf.mxu0 }
 0x835   :  { %v972_v55 = vmul.f32 %v970_v45, %v963_v54  ;;  %v979_v59 = vmax.f32 %v977_v57, 0.0 }
 0x836   :  { %v1296_v56 = vpop.f32.mrf.mxu0 }
 0x837   :  { %v978_v30 = vadd.f32 %v976_v53, %v972_v55 }
 0x839   :  { %v980_v58 = vmax.f32 %v978_v30, 0.0 }
 0x83b   :  { %1298 = vmatpush3.msra.mxu1 %v980_v58 }
 0x83c   :  { %1299 = vmatprep.subr.mxu1 %v1374_v35 }
 0x83d   :  { %1300 = vmatpush3.msra.mxu1 %v979_v59 }
 0x83e   :  { %1302 = vmatmul.mubr.msk.f32.vlgmr.msra.gmra.mxu1 %vm258_vm4, %v981_v32  ;;  %1304 = vmatprep.subr.mxu1 %v1374_v35 }
 0x83f   :  { %1305 = vmatpush3.msra.mxu1 %v1056_v25  ;;  %1308 = vmatprep.mubr.msk.f32.mxu1 %vm1378_vm11, %v1374_v35 }
 0x840   :  { %1306 = vmatprep.subr.mxu1 %v1374_v35 }
 0x841   :  { %1307 = vmatpush3.msra.mxu1 %v1055_v1 }
 0x8fe   :  { %v1051_v42 = vpop.f32.mrf.mxu1 }
 0x8ff   :  { %1309 = vmatmul.mubr.msk.f32.vlgmr.msra.gmra.mxu1 %vm258_vm4, %v1051_v42  ;;  %vm1161_vm4 = vcmask 1024  }
 0x900   :  { %v1303_v52 = vpop.f32.mrf.mxu1 }
 0x9bf   :  { %v1137_v4 = vpop.f32.mrf.mxu1 }
 0x9c0   :  { %v1138_v5 = vadd.f32 %v1137_v4, %v1067_v2 }
 0x9c1   :  { %v1310_v6 = vpop.f32.mrf.mxu1 }
 0x9c2   :  { %v1145_v35 = vadd.f32 %v1144_v3, %v1138_v5 }
 0x9c4   :  { %v1146_v33 = vmax.f32 %v1145_v35, 0.0 }
 0x9c6   :  { %v1151_v8 = vmul.f32 %v1150_v7, %v1146_v33 }
 0x9c8   :  { %v1153_v12 = vsel %vm1152_vm8, %v1151_v8, 0.0 }
 0x9c9   :  { %1154 = vadd.xlane.f32.xlu0 %v1153_v12 }
 0xa52   :  { %v1155_v10 = vpop.xlane.xlu0 %1154 }
 0xa53   :  { %v1160_v29 = vadd.f32 %v1159_v9, %v1155_v10 }
 0xa55   :  { %1162 = vst.msk [vmem:[%s1763_s11] sm:$0x3] %vm1161_vm4, %v1160_v29 }
 0xa56   :  { %1167 = vsyncpa [#allocation3], 1 }
 0xa57   :  { %1168 = vsyncpa [#allocation5], 1 }

</bundles_post_ra>
